<compile_context>
chip_gen: v7x
topology: tpu7x:2x2x1
jax: 0.10.0
libtpu: 0.0.40
codegen_flags: <defaults>
</compile_context>

<pallas_src>
import functools

import jax
import jax.numpy as jnp
from jax import lax
from jax.experimental import pallas as pl
from jax.experimental.pallas import tpu as pltpu


def _activation(h, activation_function):
    # Static Python switch -> only the chosen branch is traced.
    if activation_function == 0:      # Softsign
        return h / (1.0 + jnp.abs(h))
    elif activation_function == 1:    # Softplus (numerically stable; 2 EUP ops/elem)
        return jnp.log1p(jnp.exp(-jnp.abs(h))) + jnp.maximum(h, 0.0)
    elif activation_function == 2:    # Tanh
        return jnp.tanh(h)
    elif activation_function == 3:    # Tanhshrink
        return h - jnp.tanh(h)
    elif activation_function == 4:    # ReLU
        return jnp.maximum(h, 0.0)
    elif activation_function == 5:    # RReLU, eval-mode fixed slope (1/8+1/3)/2
        # TODO(synk): training-mode RReLU samples a random slope per element
        # (would need pltpu.prng_*); eval-mode mean slope is implemented.
        return jnp.where(h >= 0.0, h, h * ((1.0 / 8.0 + 1.0 / 3.0) / 2.0))
    else:
        raise ValueError("Invalid activation function identifier")


def _mlp_kernel(x_ref, w_in_ref, b_in_ref, w_hid_ref, b_hid_ref,
                w_out_ref, b_out_ref, o_ref, *,
                num_hidden, activation_function, compute_dtype, precision):
    # Batch-on-lanes layout:
    #   x_ref:  (TN, 3)  (read straight from the (N, 3) input -> no host transpose)
    #   w_in:   (H, 3)      b_in:  (H, 1)
    #   w_hid:  (L, H, H)   b_hid: (L, H, 1)
    #   w_out:  (3, H)      b_out: (3, 1)      o_ref: (3, TN)
    x = x_ref[...].astype(compute_dtype)

    # First layer: (H, 3) . (TN, 3)^T -> (H, TN).  Contract the minor dims of
    # both operands (same MXU pattern as q @ k^T) so no transpose of the x
    # block is ever materialized.
    z = lax.dot_general(w_in_ref[...], x,
                        dimension_numbers=(((1,), (1,)), ((), ())),
                        preferred_element_type=jnp.float32,
                        precision=precision)
    h = _activation((z + b_in_ref[...]).astype(compute_dtype),
                    activation_function)

    # num_hidden is static and small -> fully unrolled.  (Switch to
    # lax.fori_loop with dynamic w_hid_ref[l] indexing if L ever grows past ~8.)
    for l in range(num_hidden):
        z = jnp.dot(w_hid_ref[l], h,
                    preferred_element_type=jnp.float32, precision=precision)
        h = _activation((z + b_hid_ref[l]).astype(compute_dtype),
                        activation_function)

    out = (jnp.dot(w_out_ref[...], h,
                   preferred_element_type=jnp.float32, precision=precision)
           + b_out_ref[...])
    o_ref[...] = out.astype(o_ref.dtype)


def _round_up(a, b):
    return (a + b - 1) // b * b


def _has_multiple_tensorcores():
    # Conservative auto-detect for v7x (2 TensorCores/chip).  On anything else
    # (or if detection fails) fall back to the single-core path.
    try:
        kind = jax.devices()[0].device_kind.lower()
    except Exception:
        return False
    return "v7" in kind or "7x" in kind


def mlp_forward(x, params, *, num_hidden=None, activation_function=2,
                tile_n=1024, compute_dtype=jnp.float32, precision=None,
                core_parallel=None):
    """Forward pass of Net.  x: (N, 3) float32; returns (N, 3) float32.

    compute_dtype=jnp.bfloat16 is the recommended fast path on v6e/v7x
    (bf16 EUP transcendentals + bf16 MXU inputs, f32 accumulation); keep the
    default float32 on v5e and whenever strict 1e-4 agreement is required.
    """
    N, in_dim = x.shape
    assert in_dim == 3
    assert tile_n % 128 == 0, "tile_n must be lane-aligned (multiple of 128)"
    w_in, b_in = params["w_in"], params["b_in"]
    w_hid, b_hid = params["w_hid"], params["b_hid"]
    w_out, b_out = params["w_out"], params["b_out"]
    H = w_in.shape[0]
    L = w_hid.shape[0]
    if num_hidden is None:
        num_hidden = L
    if core_parallel is None:
        core_parallel = _has_multiple_tensorcores()

    # Pre-cast the weights ONCE in the wrapper (not per-layer inside the
    # kernel) when a low-precision path is requested.  Biases stay f32 and are
    # added to the f32 dot accumulators.
    if compute_dtype != jnp.float32:
        w_in = w_in.astype(compute_dtype)
        w_hid = w_hid.astype(compute_dtype)
        w_out = w_out.astype(compute_dtype)

    # Effective batch tile: lane-aligned, no larger than the padded batch, and
    # (when splitting across TensorCores) small enough for >= 2 grid steps.
    tile = min(tile_n, _round_up(N, 128))
    if core_parallel:
        tile = min(tile, _round_up(-(-N // 2), 128))
    n_pad = _round_up(N, tile)
    # Only pad when the tile does not divide N (no-op for the common case).
    x_in = x if n_pad == N else jnp.pad(x, ((0, n_pad - N), (0, 0)))

    kernel = functools.partial(
        _mlp_kernel, num_hidden=num_hidden,
        activation_function=activation_function,
        compute_dtype=compute_dtype, precision=precision)

    # Advisory cost estimate so XLA schedules surrounding ops sensibly.
    flops = 2 * n_pad * (3 * H + num_hidden * H * H + H * 3)
    transcendentals = n_pad * H * (num_hidden + 1)
    w_itemsize = jnp.dtype(compute_dtype).itemsize
    weight_bytes = (w_itemsize * (H * 3 + L * H * H + 3 * H)
                    + 4 * (H + L * H + 3))
    cost = pl.CostEstimate(flops=int(flops),
                           transcendentals=int(transcendentals),
                           bytes_accessed=int(4 * 6 * n_pad + weight_bytes))

    # Explicit VMEM budget: double-buffered (tile,3)/(3,tile) in/out blocks,
    # resident weights, a few (H, tile) f32 temporaries, plus headroom.
    # Capped at 32 MiB so it stays well under v7x's 64 MiB physical VMEM even
    # if tile/H are raised later.
    vmem_est = (2 * 2 * (4 * 3 * tile)     # double-buffered x / out blocks
                + 2 * weight_bytes         # weight/bias blocks
                + 6 * (4 * H * tile)       # activation temporaries
                + (4 << 20))               # compiler scratch headroom
    vmem_limit = int(min(32 * 1024 * 1024, max(16 * 1024 * 1024, vmem_est)))

    # NOTE: for wide nets (H >= 256, L >= 4) consider marking the weight/bias
    # BlockSpecs single-buffered (pipeline_mode=pl.Buffered(1)) since their
    # index_map is constant across the grid; negligible at H=32.
    dim_sem = (pltpu.CORE_PARALLEL,) if core_parallel else ("parallel",)

    grid = (n_pad // tile,)
    out_t = pl.pallas_call(
        kernel,
        out_shape=jax.ShapeDtypeStruct((3, n_pad), x.dtype),
        grid_spec=pltpu.PrefetchScalarGridSpec(
            num_scalar_prefetch=0,
            grid=grid,
            in_specs=[
                pl.BlockSpec((tile, 3), lambda i: (i, 0)),        # x tile
                pl.BlockSpec((H, 3), lambda i: (0, 0)),           # w_in
                pl.BlockSpec((H, 1), lambda i: (0, 0)),           # b_in
                pl.BlockSpec((L, H, H), lambda i: (0, 0, 0)),     # w_hid
                pl.BlockSpec((L, H, 1), lambda i: (0, 0, 0)),     # b_hid
                pl.BlockSpec((3, H), lambda i: (0, 0)),           # w_out
                pl.BlockSpec((3, 1), lambda i: (0, 0)),           # b_out
            ],
            out_specs=pl.BlockSpec((3, tile), lambda i: (0, i)),
        ),
        compiler_params=pltpu.CompilerParams(
            dimension_semantics=dim_sem,
            vmem_limit_bytes=vmem_limit,
        ),
        cost_estimate=cost,
    )(x_in, w_in, b_in, w_hid, b_hid, w_out, b_out)

    # Slice first (drops any batch padding), then transpose the small (3, N)
    # result back to the PyTorch (N, 3) layout.
    return jnp.transpose(out_t[:, :N])


def init_params(key, hidden_layers, nodes_per_layer):
    """Deterministic init mimicking nn.Linear's U(-1/sqrt(fan_in), 1/sqrt(fan_in)).

    Weights are kept in PyTorch's (out_features, in_features) layout; biases are
    stored as (out_features, 1) columns for the batch-on-lanes kernel layout."""
    H = nodes_per_layer
    ks = jax.random.split(key, 6)

    def uni(k, shape, fan_in):
        bound = 1.0 / jnp.sqrt(jnp.float32(fan_in))
        return jax.random.uniform(k, shape, jnp.float32, -bound, bound)

    L = max(hidden_layers, 1)  # keep >= 1 slot so shapes stay static
    params = {
        "w_in": uni(ks[0], (H, 3), 3),
        "b_in": uni(ks[1], (H, 1), 3),
        "w_hid": uni(ks[2], (L, H, H), H),
        "b_hid": uni(ks[3], (L, H, 1), H),
        "w_out": uni(ks[4], (3, H), H),
        "b_out": uni(ks[5], (3, 1), H),
    }
    if hidden_layers == 0:
        # dummy slot is never used (kernel unrolls 0 iterations)
        params["w_hid"] = jnp.zeros_like(params["w_hid"])
        params["b_hid"] = jnp.zeros_like(params["b_hid"])
    return params


def mlp_reference(x, params, hidden_layers, activation_function=2):
    """Pure-JAX reference in the standard (N, features) layout."""
    def act(h):
        return _activation(h, activation_function)

    h = act(x @ params["w_in"].T + params["b_in"].T)
    for l in range(hidden_layers):
        h = act(h @ params["w_hid"][l].T + params["b_hid"][l].T)
    return h @ params["w_out"].T + params["b_out"].T


if __name__ == "__main__":
    hidden_layers = 3
    nodes_per_layer = 32      # hidden width H
    activation_function = 2   # Tanh
    N = 1024                  # (x, y, t) collocation points
    tile_n = 512              # grid=(2,) -> pipelined DMA; both TCs under core-parallel

    key = jax.random.PRNGKey(0)
    kx, kp = jax.random.split(key)
    x = jax.random.normal(kx, (N, 3), dtype=jnp.float32)
    params = init_params(kp, hidden_layers, nodes_per_layer)

    # f32 path (default; required on v5e, and for strict 1e-4 agreement).
    out = mlp_forward(x, params, num_hidden=hidden_layers,
                      activation_function=activation_function, tile_n=tile_n)
    out = jax.block_until_ready(out)

    ref = mlp_reference(x, params, hidden_layers, activation_function)
    assert out.shape == (N, 3)
    err = float(jnp.max(jnp.abs(out - ref)))
    assert err < 1e-4, f"f32 path mismatch vs JAX reference: {err}"

    # bf16 fast path (recommended on v6e/v7x where EUP/VPU have native bf16):
    # same kernel, weights pre-cast once, activations in bf16, f32 accumulation.
    out_bf16 = jax.block_until_ready(
        mlp_forward(x, params, num_hidden=hidden_layers,
                    activation_function=activation_function, tile_n=tile_n,
                    compute_dtype=jnp.bfloat16))
    assert out_bf16.shape == (N, 3)
    assert bool(jnp.all(jnp.isfinite(out_bf16)))
    err_bf16 = float(jnp.max(jnp.abs(out_bf16 - ref)))
    assert err_bf16 < 0.5, f"bf16 path sanity check failed: {err_bf16}"

    print("KERNEL_OK")
</pallas_src>

<mosaic_0001>
module attributes {stable_mosaic.version = 11 : i64} {
  func.func @_mlp_kernel(%arg0: i32, %arg1: memref<512x3xf32, #tpu.memory_space<vmem>>, %arg2: memref<32x3xf32, #tpu.memory_space<vmem>>, %arg3: memref<32x1xf32, #tpu.memory_space<vmem>>, %arg4: memref<3x32x32xf32, #tpu.memory_space<vmem>>, %arg5: memref<3x32x1xf32, #tpu.memory_space<vmem>>, %arg6: memref<3x32xf32, #tpu.memory_space<vmem>>, %arg7: memref<3x1xf32, #tpu.memory_space<vmem>>, %arg8: memref<3x512xf32, #tpu.memory_space<vmem>>) attributes {dimension_semantics = [#tpu.dimension_semantics<parallel>], iteration_bounds = array<i64: 2>, scalar_prefetch = 0 : i64, scratch_operands = 0 : i64, tpu.core_type = #tpu.core_type<tc>, window_params = [{transform_indices = @transform_0, window_bounds = array<i64: 512, 3>}, {pipeline_mode = #tpu.pipeline_mode<synchronous>, transform_indices = @transform_1, window_bounds = array<i64: 32, 3>}, {pipeline_mode = #tpu.pipeline_mode<synchronous>, transform_indices = @transform_2, window_bounds = array<i64: 32, 1>}, {pipeline_mode = #tpu.pipeline_mode<synchronous>, transform_indices = @transform_3, window_bounds = array<i64: 3, 32, 32>}, {pipeline_mode = #tpu.pipeline_mode<synchronous>, transform_indices = @transform_4, window_bounds = array<i64: 3, 32, 1>}, {pipeline_mode = #tpu.pipeline_mode<synchronous>, transform_indices = @transform_5, window_bounds = array<i64: 3, 32>}, {pipeline_mode = #tpu.pipeline_mode<synchronous>, transform_indices = @transform_6, window_bounds = array<i64: 3, 1>}, {transform_indices = @transform_7, window_bounds = array<i64: 3, 512>}]} {
    %c0 = arith.constant 0 : index
    %c0_0 = arith.constant 0 : index
    %0 = vector.load %arg1[%c0, %c0_0] : memref<512x3xf32, #tpu.memory_space<vmem>>, vector<512x3xf32>
    %c0_1 = arith.constant 0 : index
    %c0_2 = arith.constant 0 : index
    %1 = vector.load %arg2[%c0_1, %c0_2] : memref<32x3xf32, #tpu.memory_space<vmem>>, vector<32x3xf32>
    %cst = arith.constant dense<0.000000e+00> : vector<32x512xf32>
    %2 = tpu.matmul %1, %0, %cst {dimension_numbers = #tpu.dot_dimension_numbers<[1], [1], [0], [0], [0, 0, 1, 0], [], []>} : vector<32x3xf32>, vector<512x3xf32>, vector<32x512xf32> -> vector<32x512xf32>
    %c0_3 = arith.constant 0 : index
    %c0_4 = arith.constant 0 : index
    %3 = vector.load %arg3[%c0_3, %c0_4] : memref<32x1xf32, #tpu.memory_space<vmem>>, vector<32x1xf32>
    %4 = vector.broadcast %3 : vector<32x1xf32> to vector<32x512xf32>
    %5 = arith.addf %2, %4 : vector<32x512xf32>
    %6 = math.tanh %5 : vector<32x512xf32>
    %c0_5 = arith.constant 0 : index
    %c0_6 = arith.constant 0 : index
    %c0_7 = arith.constant 0 : index
    %7 = vector.load %arg4[%c0_5, %c0_6, %c0_7] : memref<3x32x32xf32, #tpu.memory_space<vmem>>, vector<1x32x32xf32>
    %8 = vector.shape_cast %7 : vector<1x32x32xf32> to vector<32x32xf32>
    %cst_8 = arith.constant dense<0.000000e+00> : vector<32x512xf32>
    %9 = tpu.matmul %8, %6, %cst_8 {dimension_numbers = #tpu.dot_dimension_numbers<[1], [0], [0], [1], [0, 0, 1, 1], [], []>} : vector<32x32xf32>, vector<32x512xf32>, vector<32x512xf32> -> vector<32x512xf32>
    %c0_9 = arith.constant 0 : index
    %c0_10 = arith.constant 0 : index
    %c0_11 = arith.constant 0 : index
    %10 = vector.load %arg5[%c0_9, %c0_10, %c0_11] : memref<3x32x1xf32, #tpu.memory_space<vmem>>, vector<1x32x1xf32>
    %11 = vector.shape_cast %10 : vector<1x32x1xf32> to vector<32x1xf32>
    %12 = vector.broadcast %11 : vector<32x1xf32> to vector<32x512xf32>
    %13 = arith.addf %9, %12 : vector<32x512xf32>
    %14 = math.tanh %13 : vector<32x512xf32>
    %c1 = arith.constant 1 : index
    %c0_12 = arith.constant 0 : index
    %c0_13 = arith.constant 0 : index
    %15 = vector.load %arg4[%c1, %c0_12, %c0_13] : memref<3x32x32xf32, #tpu.memory_space<vmem>>, vector<1x32x32xf32>
    %16 = vector.shape_cast %15 : vector<1x32x32xf32> to vector<32x32xf32>
    %cst_14 = arith.constant dense<0.000000e+00> : vector<32x512xf32>
    %17 = tpu.matmul %16, %14, %cst_14 {dimension_numbers = #tpu.dot_dimension_numbers<[1], [0], [0], [1], [0, 0, 1, 1], [], []>} : vector<32x32xf32>, vector<32x512xf32>, vector<32x512xf32> -> vector<32x512xf32>
    %c1_15 = arith.constant 1 : index
    %c0_16 = arith.constant 0 : index
    %c0_17 = arith.constant 0 : index
    %18 = vector.load %arg5[%c1_15, %c0_16, %c0_17] : memref<3x32x1xf32, #tpu.memory_space<vmem>>, vector<1x32x1xf32>
    %19 = vector.shape_cast %18 : vector<1x32x1xf32> to vector<32x1xf32>
    %20 = vector.broadcast %19 : vector<32x1xf32> to vector<32x512xf32>
    %21 = arith.addf %17, %20 : vector<32x512xf32>
    %22 = math.tanh %21 : vector<32x512xf32>
    %c2 = arith.constant 2 : index
    %c0_18 = arith.constant 0 : index
    %c0_19 = arith.constant 0 : index
    %23 = vector.load %arg4[%c2, %c0_18, %c0_19] : memref<3x32x32xf32, #tpu.memory_space<vmem>>, vector<1x32x32xf32>
    %24 = vector.shape_cast %23 : vector<1x32x32xf32> to vector<32x32xf32>
    %cst_20 = arith.constant dense<0.000000e+00> : vector<32x512xf32>
    %25 = tpu.matmul %24, %22, %cst_20 {dimension_numbers = #tpu.dot_dimension_numbers<[1], [0], [0], [1], [0, 0, 1, 1], [], []>} : vector<32x32xf32>, vector<32x512xf32>, vector<32x512xf32> -> vector<32x512xf32>
    %c2_21 = arith.constant 2 : index
    %c0_22 = arith.constant 0 : index
    %c0_23 = arith.constant 0 : index
    %26 = vector.load %arg5[%c2_21, %c0_22, %c0_23] : memref<3x32x1xf32, #tpu.memory_space<vmem>>, vector<1x32x1xf32>
    %27 = vector.shape_cast %26 : vector<1x32x1xf32> to vector<32x1xf32>
    %28 = vector.broadcast %27 : vector<32x1xf32> to vector<32x512xf32>
    %29 = arith.addf %25, %28 : vector<32x512xf32>
    %30 = math.tanh %29 : vector<32x512xf32>
    %c0_24 = arith.constant 0 : index
    %c0_25 = arith.constant 0 : index
    %31 = vector.load %arg6[%c0_24, %c0_25] : memref<3x32xf32, #tpu.memory_space<vmem>>, vector<3x32xf32>
    %cst_26 = arith.constant dense<0.000000e+00> : vector<3x512xf32>
    %32 = tpu.matmul %31, %30, %cst_26 {dimension_numbers = #tpu.dot_dimension_numbers<[1], [0], [0], [1], [0, 0, 1, 1], [], []>} : vector<3x32xf32>, vector<32x512xf32>, vector<3x512xf32> -> vector<3x512xf32>
    %c0_27 = arith.constant 0 : index
    %c0_28 = arith.constant 0 : index
    %33 = vector.load %arg7[%c0_27, %c0_28] : memref<3x1xf32, #tpu.memory_space<vmem>>, vector<3x1xf32>
    %34 = vector.broadcast %33 : vector<3x1xf32> to vector<3x512xf32>
    %35 = arith.addf %32, %34 : vector<3x512xf32>
    %c0_29 = arith.constant 0 : index
    %c0_30 = arith.constant 0 : index
    %36 = vector.load %arg8[%c0_29, %c0_30] : memref<3x512xf32, #tpu.memory_space<vmem>>, vector<3x512xf32>
    tpu.vector_store %arg8[%c0_29, %c0_30], %35 {strides = array<i32>} : memref<3x512xf32, #tpu.memory_space<vmem>>, vector<3x512xf32>,
    return
  }
  func.func @transform_0(%arg0: i32) -> (i32, i32) {
    %c0_i32 = arith.constant 0 : i32
    %c0_i32_0 = arith.constant 0 : i32
    return %arg0, %c0_i32 : i32, i32
  }
  func.func @transform_1(%arg0: i32) -> (i32, i32) {
    %c0_i32 = arith.constant 0 : i32
    %c0_i32_0 = arith.constant 0 : i32
    %c0_i32_1 = arith.constant 0 : i32
    return %c0_i32, %c0_i32_0 : i32, i32
  }
  func.func @transform_2(%arg0: i32) -> (i32, i32) {
    %c0_i32 = arith.constant 0 : i32
    %c0_i32_0 = arith.constant 0 : i32
    %c0_i32_1 = arith.constant 0 : i32
    return %c0_i32, %c0_i32_0 : i32, i32
  }
  func.func @transform_3(%arg0: i32) -> (i32, i32, i32) {
    %c0_i32 = arith.constant 0 : i32
    %c0_i32_0 = arith.constant 0 : i32
    %c0_i32_1 = arith.constant 0 : i32
    %c0_i32_2 = arith.constant 0 : i32
    return %c0_i32, %c0_i32_0, %c0_i32_1 : i32, i32, i32
  }
  func.func @transform_4(%arg0: i32) -> (i32, i32, i32) {
    %c0_i32 = arith.constant 0 : i32
    %c0_i32_0 = arith.constant 0 : i32
    %c0_i32_1 = arith.constant 0 : i32
    %c0_i32_2 = arith.constant 0 : i32
    return %c0_i32, %c0_i32_0, %c0_i32_1 : i32, i32, i32
  }
  func.func @transform_5(%arg0: i32) -> (i32, i32) {
    %c0_i32 = arith.constant 0 : i32
    %c0_i32_0 = arith.constant 0 : i32
    %c0_i32_1 = arith.constant 0 : i32
    return %c0_i32, %c0_i32_0 : i32, i32
  }
  func.func @transform_6(%arg0: i32) -> (i32, i32) {
    %c0_i32 = arith.constant 0 : i32
    %c0_i32_0 = arith.constant 0 : i32
    %c0_i32_1 = arith.constant 0 : i32
    return %c0_i32, %c0_i32_0 : i32, i32
  }
  func.func @transform_7(%arg0: i32) -> (i32, i32) {
    %c0_i32 = arith.constant 0 : i32
    %c0_i32_0 = arith.constant 0 : i32
    return %c0_i32, %arg0 : i32, i32
  }
}

</mosaic_0001>

<bundles_post_ra>
// kernel: tpu_custom_call.1
= control target key start
LH: loop header
LB: loop body
LE: loop exit
PB: predicated region body
PF: predicated region fallthrough
CT: control target
= control target key end

     0   :  { %12 = vsyncpa [#allocation3], 0  ;;  %s2770_s0 = inlined_call_operand.vmem [shape: f32[1024,3], index: 0, kind: input, shape index: {}]   ;;  %s2771_s1 = inlined_call_operand.vmem [shape: f32[32,3], index: 1, kind: input, shape index: {}]   ;;  %s2772_s2 = inlined_call_operand.vmem [shape: f32[32,1], index: 2, kind: input, shape index: {}]   ;;  %s2773_s3 = inlined_call_operand.vmem [shape: f32[3,32,32], index: 3, kind: input, shape index: {}]   ;;  %s2774_s4 = inlined_call_operand.vmem [shape: f32[3,32,1], index: 4, kind: input, shape index: {}]   ;;  %s2775_s5 = inlined_call_operand.vmem [shape: f32[3,32], index: 5, kind: input, shape index: {}]   ;;  %s2776_s6 = inlined_call_operand.vmem [shape: f32[3,1], index: 6, kind: input, shape index: {}]   ;;  %s2777_s7 = inlined_call_operand.hbm [shape: f32[3,1024], index: 7, kind: output, shape index: {}]  }
   0x1   :  { %14 = vsyncpa [#allocation3 + $0x1], 0  ;;  %s2359_s24 = smov 0   ;;  %s2361_s25 = smov 0  }
   0x2   :  { %s2363_s26 = smov 0   ;;  %s2365_s27 = smov 0  }
   0x3 LB: > { %s2380_s28 = sadd.s32 4294967295, %s2314_s27   ;;  %s1714_s29 = sadd.s32 4294967294, %s2314_s27   ;;  %s2314_s27 = sphi %s2365_s27, %s2785_s27   ;;  %s2310_s26 = sphi %s2363_s26, %s2784_s26   ;;  %s2306_s25 = sphi %s2361_s25, %s2783_s25   ;;  %s2302_s24 = sphi %s2359_s24, %s2782_s24  }
   0x4   : > { %s2384_s30 = sadd.s32 1, %s2314_s27   ;;  %s179_s8 = sadd.s32 1, %s2310_s26 }
   0x5   : > { %s176_s9 = ssub.s32 %s2314_s27, %s2384_s30  ;;  %p189_p0 = scmp.ne.s32.totalorder %s2310_s26, %s2306_s25 }
   0x6   : > { %p177_p1 = scmp.eq.s32.totalorder %s176_s9, 0  ;;  %p190_p2 = scmp.eq.s32.totalorder %s2380_s28, 1 }
   0x7   : > { %p195_p3 = scmp.ne.s32.totalorder %s2306_s25, %s2302_s24  ;;  %p196_p4 = scmp.eq.s32.totalorder %s1714_s29, 1 }
   0x8   : > { %s2395_s10 = scalar_select %p177_p1, %s2310_s26, %s179_s8  }
   0x9   : > { %p2397_p5 = por %p190_p2, %p189_p0  ;;  %p2401_p6 = por %p196_p4, %p195_p3 }
   0xa   : > { %p1717_p7 = scmp.ge.s32.totalorder %s2314_s27, 1  ;;  %p241_p8 = scmp.lt.s32.totalorder %s2314_s27, 3 }
   0xc   : > { %p242_p9 = pnand %p1717_p7, %p241_p8 }
   0xd   : > { %s1719_s13 = sshll.u32 (!%p242_p9), %s2380_s28, 6  ;;  %vm372_vm0 = vcmask (!%p242_p9), 23552   ;;  %v2411_v0 = vld [vmem:[%s2771_s1] sm:$0xff] (!%p242_p9)  ;;  %v2316_v2 = vmov (!%p242_p9), 0   ;;  %v350_v3 = vld [vmem:[%s2772_s2 + $0x10] sm:$0xff] (!%p242_p9)  ;;  %v349_v4 = vld [vmem:[%s2772_s2 + $0x8] sm:$0xff] (!%p242_p9) }
   0xe   : > { %245 = sbr.rel (%p242_p9) target bundleno = 1304 (0x518), region = 48  ;;  %p274_p10 = scmp.lt.s32.totalorder (!%p242_p9), %s1719_s13, 127  ;;  %1873 = vmatprep.mubr.msk.f32.mxu0 (!%p242_p9), %vm372_vm0, %v2411_v0  ;;  %1913 = vmatprep.mubr.msk.f32.mxu1 (!%p242_p9), %vm372_vm0, %v2411_v0  ;;  %v348_v1 = vld [vmem:[%s2772_s2] sm:$0xff] (!%p242_p9)  ;;  %v351_v5 = vld [vmem:[%s2772_s2 + $0x18] sm:$0xff] (!%p242_p9)  ;;  %vm2436_vm1 = vmpackc.low (!%p242_p9), %vm372_vm0, %vm372_vm0  ;;  %v2317_v6 = vmov (!%p242_p9), 0.0   ;;  %vm799_vm2 = vcmask (!%p242_p9), 261120  }
   0xf   : > { %2122 = vset.pattern.permute.xlu0 (!%p242_p9), %v2316_v2  ;;  %2123 = vset.pattern.permute.xlu1 (!%p242_p9), %v2316_v2  ;;  %v775_v10 = vld [vmem:[%s2774_s4] sm:$0xff] (!%p242_p9)  ;;  %v777_v26 = vld [vmem:[%s2774_s4 + $0x10] sm:$0xff] (!%p242_p9)  ;;  %v776_v27 = vld [vmem:[%s2774_s4 + $0x8] sm:$0xff] (!%p242_p9)  ;;  %s270_s17 = sand.u32 (!%p242_p9), 1, %s2306_s25   ;;  %s1840_s19 = sshll.u32 (!%p242_p9), %s2380_s28, 8 }
  0x10   : > { %354 = vperm.xlu0 (!%p242_p9), %2122, %v348_v1   ;;  %364 = vperm.xlu1 (!%p242_p9), %2123, %v350_v3   ;;  %v778_v37 = vld [vmem:[%s2774_s4 + $0x18] sm:$0xff] (!%p242_p9)  ;;  %v1805_v41 = vld [vmem:[%s2774_s4 + $0x20] sm:$0xff] (!%p242_p9)  ;;  %v1806_v42 = vld [vmem:[%s2774_s4 + $0x28] sm:$0xff] (!%p242_p9)  ;;  %s1718_s18 = sshll.u32 (!%p242_p9), %s270_s17, 4  ;;  %s1641_s8 = scalar_lea.sflag (!%p242_p9), [#allocation3], %s270_s17 }
  0x11   : > { %v1807_v51 = vld [vmem:[%s2774_s4 + $0x30] sm:$0xff] (!%p242_p9)  ;;  %v1808_v53 = vld [vmem:[%s2774_s4 + $0x38] sm:$0xff] (!%p242_p9)  ;;  %v1821_v57 = vld [vmem:[%s2774_s4 + $0x40] sm:$0xff] (!%p242_p9)  ;;  %s272_s20 = scalar_lea.vmem (!%p242_p9), [#allocation2], %s1718_s18  ;;  %s2318_s28 = smov (!%p242_p9), [#allocation2]  }
  0x12   : > { %v1822_v58 = vld [vmem:[%s2774_s4 + $0x48] sm:$0xff] (!%p242_p9)  ;;  %s1655_s21 = sshll.u32 (!%p242_p9), %s272_s20, 4  ;;  %s2730_s21 = int_to_ptr.vmem [resolvable:$true] %s1655_s21 }
  0x13   : > { %s2252_s9 = scalar_lea.vmem (!%p242_p9), %s2730_s21, 256 }
  0x14   : > { %359 = vperm.xlu0 (!%p242_p9), %2122, %v349_v4   ;;  %369 = vperm.xlu1 (!%p242_p9), %2123, %v351_v5   ;;  %v1823_v4 = vld [vmem:[%s2774_s4 + $0x50] sm:$0xff] (!%p242_p9)  ;;  %p2253_p11 = scmp.ne.s32.totalorder (!%p242_p9), %s2730_s21, %s2252_s9 }
  0x15   : > { %s2787_s13 = smov (!%p274_p10, %s1719_s13), 127 }
  0x16   : > { %s1720_s29 = sshll.u32 %s2787_s13, 3  ;;  %p2254_p12 = pnand %p2253_p11, %p2397_p5 }
  0x17   : > { %s2432_s14 = scalar_lea.vmem %s2770_s0, %s1720_s29  ;;  %s2728_s29 = scalar_lea.hbm %s2777_s7, %s1840_s19 }
  0x18   : > { %v296_v7 = vld [vmem:[%s2432_s14 + $0x80] sm:$0xff]  ;;  %v297_v8 = vld [vmem:[%s2432_s14 + $0x88] sm:$0xff]  ;;  %v298_v19 = vld [vmem:[%s2432_s14 + $0x90] sm:$0xff]  ;;  %781 = vperm.xlu0 %2122, %v775_v10   ;;  %786 = vperm.xlu1 %2123, %v776_v27   ;;  %p2255_p13 = pneg %p2254_p12  ;;  %s2256_s13 = sshll.u32 %s2318_s28, 4  ;;  %s2257_s13 = int_to_ptr.vmem [resolvable:$false] %s2256_s13 }
  0x19   : > { %v328_v9 = vld [vmem:[%s2432_s14 + $0x180] sm:$0xff]  ;;  %v1921_v11 = vpack.c.bf16 %v297_v8, %v296_v7  ;;  %v329_v12 = vld [vmem:[%s2432_s14 + $0x188] sm:$0xff]  ;;  %v299_v21 = vld [vmem:[%s2432_s14 + $0x98] sm:$0xff]  ;;  %s2258_s15 = scalar_lea.vmem %s2257_s13, 512  ;;  %p2259_p0 = scmp.lt.s32.totalorder %s2730_s21, %s2257_s13 }
  0x1a   : > { %v280_v13 = vld [vmem:[%s2432_s14] sm:$0xff]  ;;  %v281_v14 = vld [vmem:[%s2432_s14 + $0x8] sm:$0xff]  ;;  %v1969_v15 = vpack.c.bf16 %v329_v12, %v328_v9  ;;  %v330_v22 = vld [vmem:[%s2432_s14 + $0x190] sm:$0xff]  ;;  %v1927_v24 = vpack.c.bf16 %v299_v21, %v298_v19  ;;  %p2260_p1 = scmp.lt.s32.totalorder %s2258_s15, %s2252_s9 }
  0x1b   : > { %v1924_v16 = vpack.c.bf16 %v281_v14, %v280_v13  ;;  %v312_v17 = vld [vmem:[%s2432_s14 + $0x100] sm:$0xff]  ;;  %v313_v18 = vld [vmem:[%s2432_s14 + $0x108] sm:$0xff]  ;;  %1923 = vmatprep.subr.msk.bf16.mxu0 %vm2436_vm1, %v1921_v11  ;;  %v331_v23 = vld [vmem:[%s2432_s14 + $0x198] sm:$0xff] }
  0x1c   : > { %v1972_v20 = vpack.c.bf16 %v313_v18, %v312_v17  ;;  %1971 = vmatprep.subr.msk.bf16.mxu1 %vm2436_vm1, %v1969_v15  ;;  %v1975_v25 = vpack.c.bf16 %v331_v23, %v330_v22  ;;  %v282_v28 = vld [vmem:[%s2432_s14 + $0x10] sm:$0xff]  ;;  %v283_v29 = vld [vmem:[%s2432_s14 + $0x18] sm:$0xff]  ;;  %v300_v32 = vld [vmem:[%s2432_s14 + $0xa0] sm:$0xff]  ;;  %791 = vperm.xlu0 %2122, %v777_v26   ;;  %p2261_p2 = por %p2260_p1, %p2259_p0 }
  0x1d   : > { %1926 = vmatpush3.bf16.xpose.msk.msra.mxu0 %vm2436_vm1, %v1924_v16  ;;  %v314_v30 = vld [vmem:[%s2432_s14 + $0x110] sm:$0xff]  ;;  %v315_v31 = vld [vmem:[%s2432_s14 + $0x118] sm:$0xff]  ;;  %v301_v33 = vld [vmem:[%s2432_s14 + $0xa8] sm:$0xff]  ;;  %v1930_v36 = vpack.c.bf16 %v283_v29, %v282_v28  ;;  %796 = vperm.xlu1 %2123, %v778_v37  }
  0x1e   : > { %1974 = vmatpush3.bf16.xpose.msk.msra.mxu1 %vm2436_vm1, %v1972_v20  ;;  %1929 = vmatprep.subr.msk.bf16.mxu0 %vm2436_vm1, %v1927_v24  ;;  %v332_v34 = vld [vmem:[%s2432_s14 + $0x1a0] sm:$0xff]  ;;  %v333_v35 = vld [vmem:[%s2432_s14 + $0x1a8] sm:$0xff]  ;;  %v1978_v38 = vpack.c.bf16 %v315_v31, %v314_v30  ;;  %v1933_v39 = vpack.c.bf16 %v301_v33, %v300_v32  ;;  %v302_v47 = vld [vmem:[%s2432_s14 + $0xb0] sm:$0xff]  ;;  %p2262_p3 = pnand %p2261_p2, %p2255_p13 }
  0x1f   : > { %1977 = vmatprep.subr.msk.bf16.mxu1 %vm2436_vm1, %v1975_v25  ;;  %v1981_v40 = vpack.c.bf16 %v333_v35, %v332_v34  ;;  %v284_v43 = vld [vmem:[%s2432_s14 + $0x20] sm:$0xff]  ;;  %v285_v44 = vld [vmem:[%s2432_s14 + $0x28] sm:$0xff]  ;;  %v303_v48 = vld [vmem:[%s2432_s14 + $0xb8] sm:$0xff] }
  0x20   : > { %v316_v45 = vld [vmem:[%s2432_s14 + $0x120] sm:$0xff]  ;;  %v317_v46 = vld [vmem:[%s2432_s14 + $0x128] sm:$0xff]  ;;  %1018 = vperm.xlu0 %2122, %v1805_v41   ;;  %v334_v49 = vld [vmem:[%s2432_s14 + $0x1b0] sm:$0xff]  ;;  %v1936_v52 = vpack.c.bf16 %v285_v44, %v284_v43  ;;  %v1939_v55 = vpack.c.bf16 %v303_v48, %v302_v47 }
  0x21   : > { %v335_v50 = vld [vmem:[%s2432_s14 + $0x1b8] sm:$0xff]  ;;  %1023 = vperm.xlu1 %2123, %v1806_v42   ;;  %v1984_v54 = vpack.c.bf16 %v317_v46, %v316_v45  ;;  %v286_v59 = vld [vmem:[%s2432_s14 + $0x30] sm:$0xff]  ;;  %v304_v63 = vld [vmem:[%s2432_s14 + $0xc0] sm:$0xff] }
  0x22   : > { %v1987_v56 = vpack.c.bf16 %v335_v50, %v334_v49  ;;  %v287_v60 = vld [vmem:[%s2432_s14 + $0x38] sm:$0xff]  ;;  %v318_v61 = vld [vmem:[%s2432_s14 + $0x130] sm:$0xff]  ;;  %v305_v1 = vld [vmem:[%s2432_s14 + $0xc8] sm:$0xff] }
  0x23   : > { %v319_v62 = vld [vmem:[%s2432_s14 + $0x138] sm:$0xff]  ;;  %v336_v2 = vld [vmem:[%s2432_s14 + $0x1c0] sm:$0xff]  ;;  %v337_v3 = vld [vmem:[%s2432_s14 + $0x1c8] sm:$0xff]  ;;  %v1942_v5 = vpack.c.bf16 %v287_v60, %v286_v59  ;;  %v1945_v9 = vpack.c.bf16 %v305_v1, %v304_v63 }
  0x24   : > { %1028 = vperm.xlu0 %2122, %v1807_v51   ;;  %v1824_v7 = vld [vmem:[%s2774_s4 + $0x58] sm:$0xff]  ;;  %v1990_v8 = vpack.c.bf16 %v319_v62, %v318_v61  ;;  %v1993_v10 = vpack.c.bf16 %v337_v3, %v336_v2  ;;  %v1479_v11 = vld [vmem:[%s2776_s6] sm:$0x7]  ;;  %v289_v13 = vld [vmem:[%s2432_s14 + $0x48] sm:$0xff] }
  0x25   : > { %1932 = vmatpush3.bf16.xpose.msk.msra.mxu0 %vm2436_vm1, %v1930_v36  ;;  %1033 = vperm.xlu1 %2123, %v1808_v53   ;;  %v288_v12 = vld [vmem:[%s2432_s14 + $0x40] sm:$0xff]  ;;  %v321_v15 = vld [vmem:[%s2432_s14 + $0x148] sm:$0xff]  ;;  %v306_v16 = vld [vmem:[%s2432_s14 + $0xd0] sm:$0xff] }
  0x26   : > { %1980 = vmatpush3.bf16.xpose.msk.msra.mxu1 %vm2436_vm1, %v1978_v38  ;;  %1935 = vmatprep.subr.msk.bf16.mxu0 %vm2436_vm1, %v1933_v39  ;;  %v320_v14 = vld [vmem:[%s2432_s14 + $0x140] sm:$0xff]  ;;  %v307_v17 = vld [vmem:[%s2432_s14 + $0xd8] sm:$0xff]  ;;  %v338_v18 = vld [vmem:[%s2432_s14 + $0x1d0] sm:$0xff]  ;;  %v1948_v20 = vpack.c.bf16 %v289_v13, %v288_v12 }
  0x27   : > { %1983 = vmatprep.subr.msk.bf16.mxu1 %vm2436_vm1, %v1981_v40  ;;  %v339_v19 = vld [vmem:[%s2432_s14 + $0x1d8] sm:$0xff]  ;;  %v1996_v21 = vpack.c.bf16 %v321_v15, %v320_v14  ;;  %v1951_v22 = vpack.c.bf16 %v307_v17, %v306_v16  ;;  %v290_v24 = vld [vmem:[%s2432_s14 + $0x50] sm:$0xff]  ;;  %v308_v28 = vld [vmem:[%s2432_s14 + $0xe0] sm:$0xff] }
  0x28   : > { %1254 = vperm.xlu0 %2122, %v1821_v57   ;;  %v1999_v23 = vpack.c.bf16 %v339_v19, %v338_v18  ;;  %v291_v25 = vld [vmem:[%s2432_s14 + $0x58] sm:$0xff]  ;;  %v322_v26 = vld [vmem:[%s2432_s14 + $0x150] sm:$0xff]  ;;  %v309_v29 = vld [vmem:[%s2432_s14 + $0xe8] sm:$0xff] }
  0x29   : > { %1259 = vperm.xlu1 %2123, %v1822_v58   ;;  %v323_v27 = vld [vmem:[%s2432_s14 + $0x158] sm:$0xff]  ;;  %v340_v30 = vld [vmem:[%s2432_s14 + $0x1e0] sm:$0xff]  ;;  %v341_v31 = vld [vmem:[%s2432_s14 + $0x1e8] sm:$0xff]  ;;  %v1954_v32 = vpack.c.bf16 %v291_v25, %v290_v24  ;;  %v1957_v34 = vpack.c.bf16 %v309_v29, %v308_v28 }
  0x2a   : > { %v2002_v33 = vpack.c.bf16 %v323_v27, %v322_v26  ;;  %v2005_v35 = vpack.c.bf16 %v341_v31, %v340_v30  ;;  %v292_v36 = vld [vmem:[%s2432_s14 + $0x60] sm:$0xff]  ;;  %v293_v37 = vld [vmem:[%s2432_s14 + $0x68] sm:$0xff]  ;;  %v310_v40 = vld [vmem:[%s2432_s14 + $0xf0] sm:$0xff] }
  0x2b   : > { %v324_v38 = vld [vmem:[%s2432_s14 + $0x160] sm:$0xff]  ;;  %v325_v39 = vld [vmem:[%s2432_s14 + $0x168] sm:$0xff]  ;;  %v311_v41 = vld [vmem:[%s2432_s14 + $0xf8] sm:$0xff]  ;;  %v1960_v44 = vpack.c.bf16 %v293_v37, %v292_v36 }
  0x2c   : > { %1264 = vperm.xlu0 %2122, %v1823_v4   ;;  %v342_v42 = vld [vmem:[%s2432_s14 + $0x1f0] sm:$0xff]  ;;  %v343_v43 = vld [vmem:[%s2432_s14 + $0x1f8] sm:$0xff]  ;;  %v2008_v45 = vpack.c.bf16 %v325_v39, %v324_v38  ;;  %v1963_v46 = vpack.c.bf16 %v311_v41, %v310_v40 }
  0x2d   : > { %1938 = vmatpush3.bf16.xpose.msk.msra.mxu0 %vm2436_vm1, %v1936_v52  ;;  %1269 = vperm.xlu1 %2123, %v1824_v7   ;;  %v2011_v47 = vpack.c.bf16 %v343_v43, %v342_v42  ;;  %v294_v48 = vld [vmem:[%s2432_s14 + $0x70] sm:$0xff]  ;;  %v295_v49 = vld [vmem:[%s2432_s14 + $0x78] sm:$0xff] }
  0x2e   : > { %1986 = vmatpush3.bf16.xpose.msk.msra.mxu1 %vm2436_vm1, %v1984_v54  ;;  %1941 = vmatprep.subr.msk.bf16.mxu0 %vm2436_vm1, %v1939_v55  ;;  %v326_v50 = vld [vmem:[%s2432_s14 + $0x170] sm:$0xff]  ;;  %v327_v51 = vld [vmem:[%s2432_s14 + $0x178] sm:$0xff]  ;;  %v1966_v52 = vpack.c.bf16 %v295_v49, %v294_v48  ;;  %v345_v54 = vld [vmem:[%s2771_s1 + $0x8] sm:$0xff] }
  0x2f   : > { %1989 = vmatprep.subr.msk.bf16.mxu1 %vm2436_vm1, %v1987_v56  ;;  %v2014_v53 = vpack.c.bf16 %v327_v51, %v326_v50  ;;  %v346_v55 = vld [vmem:[%s2771_s1 + $0x10] sm:$0xff] }
  0x30   : > { %1482 = vperm.xlu0 %2122, %v1479_v11  }
  0x35   : > { %1944 = vmatpush3.bf16.xpose.msk.msra.mxu0 %vm2436_vm1, %v1942_v5 }
  0x36   : > { %1992 = vmatpush3.bf16.xpose.msk.msra.mxu1 %vm2436_vm1, %v1990_v8  ;;  %1947 = vmatprep.subr.msk.bf16.mxu0 %vm2436_vm1, %v1945_v9 }
  0x37   : > { %1995 = vmatprep.subr.msk.bf16.mxu1 %vm2436_vm1, %v1993_v10 }
  0x3d   : > { %1950 = vmatpush3.bf16.xpose.msk.msra.mxu0 %vm2436_vm1, %v1948_v20 }
  0x3e   : > { %1998 = vmatpush3.bf16.xpose.msk.msra.mxu1 %vm2436_vm1, %v1996_v21  ;;  %1953 = vmatprep.subr.msk.bf16.mxu0 %vm2436_vm1, %v1951_v22 }
  0x3f   : > { %2001 = vmatprep.subr.msk.bf16.mxu1 %vm2436_vm1, %v1999_v23 }
  0x45   : > { %1956 = vmatpush3.bf16.xpose.msk.msra.mxu0 %vm2436_vm1, %v1954_v32 }
  0x46   : > { %2004 = vmatpush3.bf16.xpose.msk.msra.mxu1 %vm2436_vm1, %v2002_v33  ;;  %1959 = vmatprep.subr.msk.bf16.mxu0 %vm2436_vm1, %v1957_v34 }
  0x47   : > { %2007 = vmatprep.subr.msk.bf16.mxu1 %vm2436_vm1, %v2005_v35 }
  0x4d   : > { %1962 = vmatpush3.bf16.xpose.msk.msra.mxu0 %vm2436_vm1, %v1960_v44 }
  0x4e   : > { %2010 = vmatpush3.bf16.xpose.msk.msra.mxu1 %vm2436_vm1, %v2008_v45  ;;  %1965 = vmatprep.subr.msk.bf16.mxu0 %vm2436_vm1, %v1963_v46 }
  0x4f   : > { %2013 = vmatprep.subr.msk.bf16.mxu1 %vm2436_vm1, %v2011_v47 }
  0x55   : > { %1968 = vmatpush3.bf16.xpose.msk.msra.mxu0 %vm2436_vm1, %v1966_v52 }
  0x56   : > { %2016 = vmatpush3.bf16.xpose.msk.msra.mxu1 %vm2436_vm1, %v2014_v53 }
  0x5c   : > { %1874 = vmatmul.mubr.msk.f32.vlgmr.msra.gmra.mrb[0].mxu0 %vm372_vm0, %v2411_v0 }
  0x5d   : > { %1914 = vmatmul.mubr.msk.f32.vlgmr.msra.gmra.mrb[0].mxu1 %vm372_vm0, %v2411_v0  ;;  %1875 = vmatprep.mubr.msk.f32.mxu0 %vm372_vm0, %v345_v54  ;;  %v347_v0 = vld [vmem:[%s2771_s1 + $0x18] sm:$0xff] }
  0x5e   : > { %1915 = vmatprep.mubr.msk.f32.mxu1 %vm372_vm0, %v345_v54 }
  0x60   : > { %1876 = vmatmul.mubr.msk.f32.gmra.mrb[2].mxu0 %vm372_vm0, %v345_v54 }
  0x61   : > { %1916 = vmatmul.mubr.msk.f32.gmra.mrb[2].mxu1 %vm372_vm0, %v345_v54  ;;  %1877 = vmatprep.mubr.msk.f32.mxu0 %vm372_vm0, %v346_v55  ;;  %v771_v54 = vld [vmem:[%s2773_s3] sm:$0xff] }
  0x62   : > { %1917 = vmatprep.mubr.msk.f32.mxu1 %vm372_vm0, %v346_v55 }
  0x64   : > { %1878 = vmatmul.mubr.msk.f32.gmra.mrb[4].mxu0 %vm372_vm0, %v346_v55 }
  0x65   : > { %1918 = vmatmul.mubr.msk.f32.gmra.mrb[4].mxu1 %vm372_vm0, %v346_v55  ;;  %1879 = vmatprep.mubr.msk.f32.mxu0 %vm372_vm0, %v347_v0  ;;  %v772_v55 = vld [vmem:[%s2773_s3 + $0x8] sm:$0xff] }
  0x66   : > { %1919 = vmatprep.mubr.msk.f32.mxu1 %vm372_vm0, %v347_v0 }
  0x68   : > { %1880 = vmatmul.mubr.msk.f32.gmra.mrb[6].mxu0 %vm372_vm0, %v347_v0 }
  0x69   : > { %1920 = vmatmul.mubr.msk.f32.gmra.mrb[6].mxu1 %vm372_vm0, %v347_v0  ;;  %876 = vmatprep.mubr.f32.mxu0 %v2317_v6  ;;  %v773_v0 = vld [vmem:[%s2773_s3 + $0x10] sm:$0xff] }
  0x6a   : > { %965 = vmatprep.mubr.f32.mxu1 %v2317_v6 }
  0x8f   : > { %v355_v56 = vpop.permute.xlu0 %354  ;;  %v365_v8 = vpop.permute.xlu1 %364 }
  0x93   : > { %v360_v2 = vpop.permute.xlu0 %359  ;;  %v370_v21 = vpop.permute.xlu1 %369 }
 0x12f   : > { %v643_v57 = vpop.f32.mrb[0].mxu0 }
 0x130   : > { %v644_v58 = vadd.f32 %v643_v57, %v355_v56  ;;  %v732_v59 = vpop.f32.mrb[0].mxu1  ;;  %v645_v60 = vpop.f32.mrb[1].mxu0 }
 0x131   : > { %v733_v61 = vadd.f32 %v732_v59, %v355_v56  ;;  %v646_v62 = vadd.f32 %v645_v60, %v355_v56  ;;  %v734_v63 = vpop.f32.mrb[1].mxu1  ;;  %v782_v57 = vpop.permute.xlu0 %781 }
 0x132   : > { %2124 = vtanh.f32 %v644_v58  ;;  %v735_v1 = vadd.f32 %v734_v63, %v355_v56  ;;  %v774_v56 = vld [vmem:[%s2773_s3 + $0x18] sm:$0xff] }
 0x133   : > { %2126 = vtanh.f32 %v733_v61  ;;  %v649_v3 = vpop.f32.mrb[2].mxu0 }
 0x134   : > { %2128 = vtanh.f32 %v646_v62  ;;  %v650_v4 = vadd.f32 %v649_v3, %v360_v2  ;;  %v738_v5 = vpop.f32.mrb[2].mxu1  ;;  %v651_v7 = vpop.f32.mrb[3].mxu0 }
 0x135   : > { %2130 = vtanh.f32 %v735_v1  ;;  %v739_v9 = vadd.f32 %v738_v5, %v360_v2  ;;  %v652_v10 = vadd.f32 %v651_v7, %v360_v2  ;;  %v740_v11 = vpop.f32.mrb[3].mxu1  ;;  %v787_v3 = vpop.permute.xlu1 %786 }
 0x136   : > { %2132 = vtanh.f32 %v650_v4  ;;  %v741_v12 = vadd.f32 %v740_v11, %v360_v2 }
 0x137   : > { %2134 = vtanh.f32 %v739_v9  ;;  %v655_v13 = vpop.f32.mrb[4].mxu0 }
 0x138   : > { %2136 = vtanh.f32 %v652_v10  ;;  %v656_v14 = vadd.f32 %v655_v13, %v365_v8  ;;  %v744_v15 = vpop.f32.mrb[4].mxu1  ;;  %v657_v16 = vpop.f32.mrb[5].mxu0 }
 0x139   : > { %2138 = vtanh.f32 %v741_v12  ;;  %v745_v17 = vadd.f32 %v744_v15, %v365_v8  ;;  %v658_v18 = vadd.f32 %v657_v16, %v365_v8  ;;  %v746_v19 = vpop.f32.mrb[5].mxu1  ;;  %v792_v13 = vpop.permute.xlu0 %791 }
 0x13a   : > { %2140 = vtanh.f32 %v656_v14  ;;  %v747_v20 = vadd.f32 %v746_v19, %v365_v8 }
 0x13b   : > { %2142 = vtanh.f32 %v745_v17  ;;  %v661_v22 = vpop.f32.mrb[6].mxu0 }
 0x13c   : > { %v2125_v23 = vpop.eup %2124  ;;  %2144 = vtanh.f32 %v658_v18  ;;  %v662_v24 = vadd.f32 %v661_v22, %v370_v21  ;;  %v750_v25 = vpop.f32.mrb[6].mxu1 }
 0x13d   : > { %v663_v26 = vpop.f32.mrb[7].mxu0  ;;  %v2127_v27 = vpop.eup %2126  ;;  %2146 = vtanh.f32 %v747_v20  ;;  %v751_v28 = vadd.f32 %v750_v25, %v370_v21 }
 0x13e   : > { %v664_v29 = vadd.f32 %v663_v26, %v370_v21  ;;  %v752_v30 = vpop.f32.mrb[7].mxu1  ;;  %v2129_v31 = vpop.eup %2128  ;;  %2148 = vtanh.f32 %v662_v24 }
 0x13f   : > { %v753_v32 = vadd.f32 %v752_v30, %v370_v21  ;;  %v2131_v33 = vpop.eup %2130  ;;  %2150 = vtanh.f32 %v751_v28  ;;  %v797_v22 = vpop.permute.xlu1 %796 }
 0x140   : > { %v2133_v34 = vpop.eup %2132  ;;  %2152 = vtanh.f32 %v664_v29 }
 0x141   : > { %v2135_v35 = vpop.eup %2134  ;;  %2154 = vtanh.f32 %v753_v32  ;;  %v2019_v36 = vpack.c.bf16 %v2133_v34, %v2125_v23 }
 0x142   : > { %v2137_v37 = vpop.eup %2136  ;;  %v2027_v38 = vpack.c.bf16 %v2135_v35, %v2127_v27 }
 0x143   : > { %v2139_v39 = vpop.eup %2138  ;;  %v2017_v40 = vpack.c.bf16 %v2137_v37, %v2129_v31 }
 0x144   : > { %v2141_v41 = vpop.eup %2140  ;;  %v2025_v42 = vpack.c.bf16 %v2139_v39, %v2131_v33 }
 0x145   : > { %v2143_v43 = vpop.eup %2142  ;;  %2018 = vmatprep.subr.bf16.mxu0 %v2017_v40 }
 0x146   : > { %v2145_v44 = vpop.eup %2144  ;;  %2026 = vmatprep.subr.bf16.mxu1 %v2025_v42  ;;  %2020 = vmatpush1.bf16.msra.mxu0 %v2019_v36 }
 0x147   : > { %v2147_v45 = vpop.eup %2146  ;;  %2028 = vmatpush1.bf16.msra.mxu1 %v2027_v38 }
 0x148   : > { %v2149_v46 = vpop.eup %2148 }
 0x149   : > { %v2151_v47 = vpop.eup %2150  ;;  %v2023_v48 = vpack.c.bf16 %v2149_v46, %v2141_v41 }
 0x14a   : > { %v2153_v49 = vpop.eup %2152  ;;  %v2031_v50 = vpack.c.bf16 %v2151_v47, %v2143_v43 }
 0x14b   : > { %v2155_v51 = vpop.eup %2154  ;;  %v2021_v52 = vpack.c.bf16 %v2153_v49, %v2145_v44 }
 0x14c   : > { %v2029_v53 = vpack.c.bf16 %v2155_v51, %v2147_v45 }
 0x14d   : > { %2022 = vmatprep.subr.bf16.mxu0 %v2021_v52 }
 0x14e   : > { %2030 = vmatprep.subr.bf16.mxu1 %v2029_v53  ;;  %2024 = vmatpush1.bf16.msra.mxu0 %v2023_v48 }
 0x14f   : > { %2032 = vmatpush1.bf16.msra.mxu1 %v2031_v50 }
 0x151   : > { %1793 = vmatmul.mubr.msk.f32.vlgmr.msra.gmra.mrb[8].mxu0 %vm799_vm2, %v771_v54 }
 0x152   : > { %1797 = vmatmul.mubr.msk.f32.vlgmr.msra.gmra.mrb[8].mxu1 %vm799_vm2, %v771_v54  ;;  %882 = vmatprep.mubr.f32.mxu0 %v2317_v6 }
 0x153   : > { %971 = vmatprep.mubr.f32.mxu1 %v2317_v6 }
 0x155   : > { %1794 = vmatmul.mubr.msk.f32.gmra.mrb[10].mxu0 %vm799_vm2, %v772_v55 }
 0x156   : > { %1798 = vmatmul.mubr.msk.f32.gmra.mrb[10].mxu1 %vm799_vm2, %v772_v55  ;;  %888 = vmatprep.mubr.f32.mxu0 %v2317_v6  ;;  %v1801_v55 = vld [vmem:[%s2773_s3 + $0x20] sm:$0xff] }
 0x157   : > { %977 = vmatprep.mubr.f32.mxu1 %v2317_v6 }
 0x159   : > { %1795 = vmatmul.mubr.msk.f32.gmra.mrb[12].mxu0 %vm799_vm2, %v773_v0 }
 0x15a   : > { %1799 = vmatmul.mubr.msk.f32.gmra.mrb[12].mxu1 %vm799_vm2, %v773_v0  ;;  %894 = vmatprep.mubr.f32.mxu0 %v2317_v6  ;;  %v1802_v0 = vld [vmem:[%s2773_s3 + $0x28] sm:$0xff] }
 0x15b   : > { %983 = vmatprep.mubr.f32.mxu1 %v2317_v6 }
 0x15d   : > { %1796 = vmatmul.mubr.msk.f32.gmra.mrb[14].mxu0 %vm799_vm2, %v774_v56 }
 0x15e   : > { %1800 = vmatmul.mubr.msk.f32.gmra.mrb[14].mxu1 %vm799_vm2, %v774_v56  ;;  %1112 = vmatprep.mubr.f32.mxu0 %v2317_v6  ;;  %v1803_v56 = vld [vmem:[%s2773_s3 + $0x30] sm:$0xff] }
 0x15f   : > { %1201 = vmatprep.mubr.f32.mxu1 %v2317_v6 }
 0x224   : > { %v878_v58 = vpop.f32.mrb[8].mxu0 }
 0x225   : > { %v879_v59 = vadd.f32 %v878_v58, %v782_v57  ;;  %v967_v60 = vpop.f32.mrb[8].mxu1  ;;  %v880_v61 = vpop.f32.mrb[9].mxu0 }
 0x226   : > { %v968_v62 = vadd.f32 %v967_v60, %v782_v57  ;;  %v881_v63 = vadd.f32 %v880_v61, %v782_v57  ;;  %v969_v1 = vpop.f32.mrb[9].mxu1  ;;  %v1019_v58 = vpop.permute.xlu0 %1018 }
 0x227   : > { %2156 = vtanh.f32 %v879_v59  ;;  %v970_v2 = vadd.f32 %v969_v1, %v782_v57  ;;  %v1804_v57 = vld [vmem:[%s2773_s3 + $0x38] sm:$0xff] }
 0x228   : > { %2158 = vtanh.f32 %v968_v62  ;;  %v884_v4 = vpop.f32.mrb[10].mxu0 }
 0x229   : > { %2160 = vtanh.f32 %v881_v63  ;;  %v885_v5 = vadd.f32 %v884_v4, %v787_v3  ;;  %v973_v7 = vpop.f32.mrb[10].mxu1  ;;  %v886_v8 = vpop.f32.mrb[11].mxu0 }
 0x22a   : > { %2162 = vtanh.f32 %v970_v2  ;;  %v974_v9 = vadd.f32 %v973_v7, %v787_v3  ;;  %v887_v10 = vadd.f32 %v886_v8, %v787_v3  ;;  %v975_v11 = vpop.f32.mrb[11].mxu1  ;;  %v1024_v4 = vpop.permute.xlu1 %1023 }
 0x22b   : > { %2164 = vtanh.f32 %v885_v5  ;;  %v976_v12 = vadd.f32 %v975_v11, %v787_v3 }
 0x22c   : > { %2166 = vtanh.f32 %v974_v9  ;;  %v890_v14 = vpop.f32.mrb[12].mxu0 }
 0x22d   : > { %2168 = vtanh.f32 %v887_v10  ;;  %v891_v15 = vadd.f32 %v890_v14, %v792_v13  ;;  %v979_v16 = vpop.f32.mrb[12].mxu1  ;;  %v892_v17 = vpop.f32.mrb[13].mxu0 }
 0x22e   : > { %2170 = vtanh.f32 %v976_v12  ;;  %v980_v18 = vadd.f32 %v979_v16, %v792_v13  ;;  %v893_v19 = vadd.f32 %v892_v17, %v792_v13  ;;  %v981_v20 = vpop.f32.mrb[13].mxu1  ;;  %v1029_v14 = vpop.permute.xlu0 %1028 }
 0x22f   : > { %2172 = vtanh.f32 %v891_v15  ;;  %v982_v21 = vadd.f32 %v981_v20, %v792_v13 }
 0x230   : > { %2174 = vtanh.f32 %v980_v18  ;;  %v896_v23 = vpop.f32.mrb[14].mxu0 }
 0x231   : > { %v2157_v24 = vpop.eup %2156  ;;  %2176 = vtanh.f32 %v893_v19  ;;  %v897_v25 = vadd.f32 %v896_v23, %v797_v22  ;;  %v985_v26 = vpop.f32.mrb[14].mxu1 }
 0x232   : > { %v898_v27 = vpop.f32.mrb[15].mxu0  ;;  %v2159_v28 = vpop.eup %2158  ;;  %2178 = vtanh.f32 %v982_v21  ;;  %v986_v29 = vadd.f32 %v985_v26, %v797_v22 }
 0x233   : > { %v899_v30 = vadd.f32 %v898_v27, %v797_v22  ;;  %v987_v31 = vpop.f32.mrb[15].mxu1  ;;  %v2161_v32 = vpop.eup %2160  ;;  %2180 = vtanh.f32 %v897_v25 }
 0x234   : > { %v988_v33 = vadd.f32 %v987_v31, %v797_v22  ;;  %v2163_v34 = vpop.eup %2162  ;;  %2182 = vtanh.f32 %v986_v29  ;;  %v1034_v23 = vpop.permute.xlu1 %1033 }
 0x235   : > { %v2165_v35 = vpop.eup %2164  ;;  %2184 = vtanh.f32 %v899_v30 }
 0x236   : > { %v2167_v36 = vpop.eup %2166  ;;  %2186 = vtanh.f32 %v988_v33  ;;  %v2035_v37 = vpack.c.bf16 %v2165_v35, %v2157_v24 }
 0x237   : > { %v2169_v38 = vpop.eup %2168  ;;  %v2043_v39 = vpack.c.bf16 %v2167_v36, %v2159_v28 }
 0x238   : > { %v2171_v40 = vpop.eup %2170  ;;  %v2033_v41 = vpack.c.bf16 %v2169_v38, %v2161_v32 }
 0x239   : > { %v2173_v42 = vpop.eup %2172  ;;  %v2041_v43 = vpack.c.bf16 %v2171_v40, %v2163_v34 }
 0x23a   : > { %v2175_v44 = vpop.eup %2174  ;;  %2034 = vmatprep.subr.bf16.mxu0 %v2033_v41 }
 0x23b   : > { %v2177_v45 = vpop.eup %2176  ;;  %2042 = vmatprep.subr.bf16.mxu1 %v2041_v43  ;;  %2036 = vmatpush1.bf16.msra.mxu0 %v2035_v37 }
 0x23c   : > { %v2179_v46 = vpop.eup %2178  ;;  %2044 = vmatpush1.bf16.msra.mxu1 %v2043_v39 }
 0x23d   : > { %v2181_v47 = vpop.eup %2180 }
 0x23e   : > { %v2183_v48 = vpop.eup %2182  ;;  %v2039_v49 = vpack.c.bf16 %v2181_v47, %v2173_v42 }
 0x23f   : > { %v2185_v50 = vpop.eup %2184  ;;  %v2047_v51 = vpack.c.bf16 %v2183_v48, %v2175_v44 }
 0x240   : > { %v2187_v52 = vpop.eup %2186  ;;  %v2037_v53 = vpack.c.bf16 %v2185_v50, %v2177_v45 }
 0x241   : > { %v2045_v54 = vpack.c.bf16 %v2187_v52, %v2179_v46 }
 0x242   : > { %2038 = vmatprep.subr.bf16.mxu0 %v2037_v53 }
 0x243   : > { %2046 = vmatprep.subr.bf16.mxu1 %v2045_v54  ;;  %2040 = vmatpush1.bf16.msra.mxu0 %v2039_v49 }
 0x244   : > { %2048 = vmatpush1.bf16.msra.mxu1 %v2047_v51 }
 0x246   : > { %1809 = vmatmul.mubr.msk.f32.vlgmr.msra.gmra.mrb[16].mxu0 %vm799_vm2, %v1801_v55 }
 0x247   : > { %1813 = vmatmul.mubr.msk.f32.vlgmr.msra.gmra.mrb[16].mxu1 %vm799_vm2, %v1801_v55  ;;  %1118 = vmatprep.mubr.f32.mxu0 %v2317_v6 }
 0x248   : > { %1207 = vmatprep.mubr.f32.mxu1 %v2317_v6 }
 0x24a   : > { %1810 = vmatmul.mubr.msk.f32.gmra.mrb[18].mxu0 %vm799_vm2, %v1802_v0 }
 0x24b   : > { %1814 = vmatmul.mubr.msk.f32.gmra.mrb[18].mxu1 %vm799_vm2, %v1802_v0  ;;  %1124 = vmatprep.mubr.f32.mxu0 %v2317_v6  ;;  %v1817_v0 = vld [vmem:[%s2773_s3 + $0x40] sm:$0xff] }
 0x24c   : > { %1213 = vmatprep.mubr.f32.mxu1 %v2317_v6 }
 0x24e   : > { %1811 = vmatmul.mubr.msk.f32.gmra.mrb[20].mxu0 %vm799_vm2, %v1803_v56 }
 0x24f   : > { %1815 = vmatmul.mubr.msk.f32.gmra.mrb[20].mxu1 %vm799_vm2, %v1803_v56  ;;  %1130 = vmatprep.mubr.f32.mxu0 %v2317_v6  ;;  %v1818_v56 = vld [vmem:[%s2773_s3 + $0x48] sm:$0xff] }
 0x250   : > { %1219 = vmatprep.mubr.f32.mxu1 %v2317_v6 }
 0x252   : > { %1812 = vmatmul.mubr.msk.f32.gmra.mrb[22].mxu0 %vm799_vm2, %v1804_v57 }
 0x253   : > { %1816 = vmatmul.mubr.msk.f32.gmra.mrb[22].mxu1 %vm799_vm2, %v1804_v57  ;;  %1348 = vmatprep.mubr.f32.mxu0 %v2317_v6  ;;  %v1819_v57 = vld [vmem:[%s2773_s3 + $0x50] sm:$0xff] }
 0x254   : > { %1437 = vmatprep.mubr.f32.mxu1 %v2317_v6 }
 0x319   : > { %v1114_v59 = vpop.f32.mrb[16].mxu0 }
 0x31a   : > { %v1115_v60 = vadd.f32 %v1114_v59, %v1019_v58  ;;  %v1203_v61 = vpop.f32.mrb[16].mxu1  ;;  %v1116_v62 = vpop.f32.mrb[17].mxu0 }
 0x31b   : > { %v1204_v63 = vadd.f32 %v1203_v61, %v1019_v58  ;;  %v1117_v1 = vadd.f32 %v1116_v62, %v1019_v58  ;;  %v1205_v2 = vpop.f32.mrb[17].mxu1  ;;  %v1255_v59 = vpop.permute.xlu0 %1254 }
 0x31c   : > { %2188 = vtanh.f32 %v1115_v60  ;;  %v1206_v3 = vadd.f32 %v1205_v2, %v1019_v58  ;;  %v1820_v58 = vld [vmem:[%s2773_s3 + $0x58] sm:$0xff] }
 0x31d   : > { %2190 = vtanh.f32 %v1204_v63  ;;  %v1120_v5 = vpop.f32.mrb[18].mxu0 }
 0x31e   : > { %2192 = vtanh.f32 %v1117_v1  ;;  %v1121_v7 = vadd.f32 %v1120_v5, %v1024_v4  ;;  %v1209_v8 = vpop.f32.mrb[18].mxu1  ;;  %v1122_v9 = vpop.f32.mrb[19].mxu0 }
 0x31f   : > { %2194 = vtanh.f32 %v1206_v3  ;;  %v1210_v10 = vadd.f32 %v1209_v8, %v1024_v4  ;;  %v1123_v11 = vadd.f32 %v1122_v9, %v1024_v4  ;;  %v1211_v12 = vpop.f32.mrb[19].mxu1  ;;  %v1260_v5 = vpop.permute.xlu1 %1259 }
 0x320   : > { %2196 = vtanh.f32 %v1121_v7  ;;  %v1212_v13 = vadd.f32 %v1211_v12, %v1024_v4 }
 0x321   : > { %2198 = vtanh.f32 %v1210_v10  ;;  %v1126_v15 = vpop.f32.mrb[20].mxu0 }
 0x322   : > { %2200 = vtanh.f32 %v1123_v11  ;;  %v1127_v16 = vadd.f32 %v1126_v15, %v1029_v14  ;;  %v1215_v17 = vpop.f32.mrb[20].mxu1  ;;  %v1128_v18 = vpop.f32.mrb[21].mxu0 }
 0x323   : > { %2202 = vtanh.f32 %v1212_v13  ;;  %v1216_v19 = vadd.f32 %v1215_v17, %v1029_v14  ;;  %v1129_v20 = vadd.f32 %v1128_v18, %v1029_v14  ;;  %v1217_v21 = vpop.f32.mrb[21].mxu1 }
 0x324   : > { %2204 = vtanh.f32 %v1127_v16  ;;  %v1218_v22 = vadd.f32 %v1217_v21, %v1029_v14  ;;  %v1265_v14 = vpop.permute.xlu0 %1264 }
 0x325   : > { %2206 = vtanh.f32 %v1216_v19  ;;  %v1132_v24 = vpop.f32.mrb[22].mxu0 }
 0x326   : > { %v2189_v25 = vpop.eup %2188  ;;  %2208 = vtanh.f32 %v1129_v20  ;;  %v1133_v26 = vadd.f32 %v1132_v24, %v1034_v23  ;;  %v1221_v27 = vpop.f32.mrb[22].mxu1 }
 0x327   : > { %v1134_v28 = vpop.f32.mrb[23].mxu0  ;;  %v2191_v29 = vpop.eup %2190  ;;  %2210 = vtanh.f32 %v1218_v22  ;;  %v1222_v30 = vadd.f32 %v1221_v27, %v1034_v23 }
 0x328   : > { %v1135_v31 = vadd.f32 %v1134_v28, %v1034_v23  ;;  %v1223_v32 = vpop.f32.mrb[23].mxu1  ;;  %v2193_v33 = vpop.eup %2192  ;;  %2212 = vtanh.f32 %v1133_v26 }
 0x329   : > { %v1224_v34 = vadd.f32 %v1223_v32, %v1034_v23  ;;  %v2195_v35 = vpop.eup %2194  ;;  %2214 = vtanh.f32 %v1222_v30  ;;  %v1270_v23 = vpop.permute.xlu1 %1269 }
 0x32a   : > { %v2197_v36 = vpop.eup %2196  ;;  %2216 = vtanh.f32 %v1135_v31 }
 0x32b   : > { %v2199_v37 = vpop.eup %2198  ;;  %2218 = vtanh.f32 %v1224_v34  ;;  %v2051_v38 = vpack.c.bf16 %v2197_v36, %v2189_v25 }
 0x32c   : > { %v2201_v39 = vpop.eup %2200  ;;  %v2059_v40 = vpack.c.bf16 %v2199_v37, %v2191_v29 }
 0x32d   : > { %v2203_v41 = vpop.eup %2202  ;;  %v2049_v42 = vpack.c.bf16 %v2201_v39, %v2193_v33 }
 0x32e   : > { %v2205_v43 = vpop.eup %2204  ;;  %v2057_v44 = vpack.c.bf16 %v2203_v41, %v2195_v35 }
 0x32f   : > { %v2207_v45 = vpop.eup %2206  ;;  %2050 = vmatprep.subr.bf16.mxu0 %v2049_v42 }
 0x330   : > { %v2209_v46 = vpop.eup %2208  ;;  %2058 = vmatprep.subr.bf16.mxu1 %v2057_v44  ;;  %2052 = vmatpush1.bf16.msra.mxu0 %v2051_v38 }
 0x331   : > { %v2211_v47 = vpop.eup %2210  ;;  %2060 = vmatpush1.bf16.msra.mxu1 %v2059_v40 }
 0x332   : > { %v2213_v48 = vpop.eup %2212 }
 0x333   : > { %v2215_v49 = vpop.eup %2214  ;;  %v2055_v50 = vpack.c.bf16 %v2213_v48, %v2205_v43 }
 0x334   : > { %v2217_v51 = vpop.eup %2216  ;;  %v2063_v52 = vpack.c.bf16 %v2215_v49, %v2207_v45 }
 0x335   : > { %v2219_v53 = vpop.eup %2218  ;;  %v2053_v54 = vpack.c.bf16 %v2217_v51, %v2209_v46 }
 0x336   : > { %v2061_v55 = vpack.c.bf16 %v2219_v53, %v2211_v47 }
 0x337   : > { %2054 = vmatprep.subr.bf16.mxu0 %v2053_v54 }
 0x338   : > { %2062 = vmatprep.subr.bf16.mxu1 %v2061_v55  ;;  %2056 = vmatpush1.bf16.msra.mxu0 %v2055_v50 }
 0x339   : > { %2064 = vmatpush1.bf16.msra.mxu1 %v2063_v52 }
 0x33b   : > { %1825 = vmatmul.mubr.msk.f32.vlgmr.msra.gmra.mrb[24].mxu0 %vm799_vm2, %v1817_v0 }
 0x33c   : > { %1829 = vmatmul.mubr.msk.f32.vlgmr.msra.gmra.mrb[24].mxu1 %vm799_vm2, %v1817_v0  ;;  %1354 = vmatprep.mubr.f32.mxu0 %v2317_v6  ;;  %v1478_v0 = vld [vmem:[%s2775_s5] sm:$0x7] }
 0x33d   : > { %1443 = vmatprep.mubr.f32.mxu1 %v2317_v6 }
 0x33f   : > { %1826 = vmatmul.mubr.msk.f32.gmra.mrb[26].mxu0 %vm799_vm2, %v1818_v56 }
 0x340   : > { %1830 = vmatmul.mubr.msk.f32.gmra.mrb[26].mxu1 %vm799_vm2, %v1818_v56  ;;  %1360 = vmatprep.mubr.f32.mxu0 %v2317_v6  ;;  %v1483_v56 = vpop.permute.xlu0 %1482 }
 0x341   : > { %1449 = vmatprep.mubr.f32.mxu1 %v2317_v6 }
 0x343   : > { %1827 = vmatmul.mubr.msk.f32.gmra.mrb[28].mxu0 %vm799_vm2, %v1819_v57 }
 0x344   : > { %1831 = vmatmul.mubr.msk.f32.gmra.mrb[28].mxu1 %vm799_vm2, %v1819_v57  ;;  %1366 = vmatprep.mubr.f32.mxu0 %v2317_v6 }
 0x345   : > { %1455 = vmatprep.mubr.f32.mxu1 %v2317_v6 }
 0x347   : > { %1828 = vmatmul.mubr.msk.f32.gmra.mrb[30].mxu0 %vm799_vm2, %v1820_v58 }
 0x348   : > { %1832 = vmatmul.mubr.msk.f32.gmra.mrb[30].mxu1 %vm799_vm2, %v1820_v58  ;;  %1552 = vmatprep.mubr.f32.mxu0 %v2317_v6 }
 0x349   : > { %1623 = vmatprep.mubr.f32.mxu1 %v2317_v6 }
 0x40e   : > { %v1350_v60 = vpop.f32.mrb[24].mxu0 }
 0x40f   : > { %v1351_v61 = vadd.f32 %v1350_v60, %v1255_v59  ;;  %v1439_v62 = vpop.f32.mrb[24].mxu1  ;;  %v1352_v63 = vpop.f32.mrb[25].mxu0 }
 0x410   : > { %v1440_v1 = vadd.f32 %v1439_v62, %v1255_v59  ;;  %v1353_v2 = vadd.f32 %v1352_v63, %v1255_v59  ;;  %v1441_v3 = vpop.f32.mrb[25].mxu1 }
 0x411   : > { %2220 = vtanh.f32 %v1351_v61  ;;  %v1442_v4 = vadd.f32 %v1441_v3, %v1255_v59 }
 0x412   : > { %2222 = vtanh.f32 %v1440_v1  ;;  %v1356_v7 = vpop.f32.mrb[26].mxu0 }
 0x413   : > { %2224 = vtanh.f32 %v1353_v2  ;;  %v1357_v8 = vadd.f32 %v1356_v7, %v1260_v5  ;;  %v1445_v9 = vpop.f32.mrb[26].mxu1  ;;  %v1358_v10 = vpop.f32.mrb[27].mxu0 }
 0x414   : > { %2226 = vtanh.f32 %v1442_v4  ;;  %v1446_v11 = vadd.f32 %v1445_v9, %v1260_v5  ;;  %v1359_v6 = vadd.f32 %v1358_v10, %v1260_v5  ;;  %v1447_v12 = vpop.f32.mrb[27].mxu1 }
 0x415   : > { %2228 = vtanh.f32 %v1357_v8  ;;  %v1448_v13 = vadd.f32 %v1447_v12, %v1260_v5 }
 0x416   : > { %2230 = vtanh.f32 %v1446_v11  ;;  %v1362_v15 = vpop.f32.mrb[28].mxu0 }
 0x417   : > { %2232 = vtanh.f32 %v1359_v6  ;;  %v1363_v16 = vadd.f32 %v1362_v15, %v1265_v14  ;;  %v1451_v17 = vpop.f32.mrb[28].mxu1  ;;  %v1364_v18 = vpop.f32.mrb[29].mxu0 }
 0x418   : > { %2234 = vtanh.f32 %v1448_v13  ;;  %v1452_v19 = vadd.f32 %v1451_v17, %v1265_v14  ;;  %v1365_v20 = vadd.f32 %v1364_v18, %v1265_v14  ;;  %v1453_v21 = vpop.f32.mrb[29].mxu1 }
 0x419   : > { %2236 = vtanh.f32 %v1363_v16  ;;  %v1454_v22 = vadd.f32 %v1453_v21, %v1265_v14 }
 0x41a   : > { %2238 = vtanh.f32 %v1452_v19  ;;  %v1368_v24 = vpop.f32.mrb[30].mxu0 }
 0x41b   : > { %v2221_v25 = vpop.eup %2220  ;;  %2240 = vtanh.f32 %v1365_v20  ;;  %v1369_v26 = vadd.f32 %v1368_v24, %v1270_v23  ;;  %v1457_v27 = vpop.f32.mrb[30].mxu1 }
 0x41c   : > { %v1370_v28 = vpop.f32.mrb[31].mxu0  ;;  %v2223_v29 = vpop.eup %2222  ;;  %2242 = vtanh.f32 %v1454_v22  ;;  %v1458_v30 = vadd.f32 %v1457_v27, %v1270_v23 }
 0x41d   : > { %v1371_v31 = vadd.f32 %v1370_v28, %v1270_v23  ;;  %v1459_v32 = vpop.f32.mrb[31].mxu1  ;;  %v2225_v33 = vpop.eup %2224  ;;  %2244 = vtanh.f32 %v1369_v26 }
 0x41e   : > { %v1460_v34 = vadd.f32 %v1459_v32, %v1270_v23  ;;  %v2227_v35 = vpop.eup %2226  ;;  %2246 = vtanh.f32 %v1458_v30 }
 0x41f   : > { %v2229_v36 = vpop.eup %2228  ;;  %2248 = vtanh.f32 %v1371_v31 }
 0x420   : > { %v2231_v37 = vpop.eup %2230  ;;  %2250 = vtanh.f32 %v1460_v34  ;;  %v2067_v38 = vpack.c.bf16 %v2229_v36, %v2221_v25 }
 0x421   : > { %v2233_v39 = vpop.eup %2232  ;;  %v2075_v40 = vpack.c.bf16 %v2231_v37, %v2223_v29 }
 0x422   : > { %v2235_v41 = vpop.eup %2234  ;;  %v2065_v42 = vpack.c.bf16 %v2233_v39, %v2225_v33 }
 0x423   : > { %v2237_v43 = vpop.eup %2236  ;;  %v2073_v44 = vpack.c.bf16 %v2235_v41, %v2227_v35 }
 0x424   : > { %v2239_v45 = vpop.eup %2238  ;;  %2066 = vmatprep.subr.bf16.mxu0 %v2065_v42 }
 0x425   : > { %v2241_v46 = vpop.eup %2240  ;;  %2074 = vmatprep.subr.bf16.mxu1 %v2073_v44  ;;  %2068 = vmatpush1.bf16.msra.mxu0 %v2067_v38 }
 0x426   : > { %v2243_v47 = vpop.eup %2242  ;;  %2076 = vmatpush1.bf16.msra.mxu1 %v2075_v40 }
 0x427   : > { %v2245_v48 = vpop.eup %2244 }
 0x428   : > { %v2247_v49 = vpop.eup %2246  ;;  %v2071_v50 = vpack.c.bf16 %v2245_v48, %v2237_v43 }
 0x429   : > { %v2249_v51 = vpop.eup %2248  ;;  %v2079_v52 = vpack.c.bf16 %v2247_v49, %v2239_v45 }
 0x42a   : > { %v2251_v53 = vpop.eup %2250  ;;  %v2069_v54 = vpack.c.bf16 %v2249_v51, %v2241_v46 }
 0x42b   : > { %v2077_v55 = vpack.c.bf16 %v2251_v53, %v2243_v47 }
 0x42c   : > { %2070 = vmatprep.subr.bf16.mxu0 %v2069_v54 }
 0x42d   : > { %2078 = vmatprep.subr.bf16.mxu1 %v2077_v55  ;;  %2072 = vmatpush1.bf16.msra.mxu0 %v2071_v50 }
 0x42e   : > { %2080 = vmatpush1.bf16.msra.mxu1 %v2079_v52 }
 0x430   : > { %1833 = vmatmul.mubr.msk.f32.vlgmr.msra.gmra.mrb[32].mxu0 %vm799_vm2, %v1478_v0 }
 0x431   : > { %1834 = vmatmul.mubr.msk.f32.vlgmr.msra.gmra.mrb[32].mxu1 %vm799_vm2, %v1478_v0 }
 0x503   : > { %v1554_v57 = vpop.f32.mrb[32].mxu0 }
 0x504   : > { %v1555_v58 = vadd.f32 %v1554_v57, %v1483_v56  ;;  %v1625_v59 = vpop.f32.mrb[32].mxu1  ;;  %v1556_v60 = vpop.f32.mrb[33].mxu0 }
 0x505   : > { %v1626_v61 = vadd.f32 %v1625_v59, %v1483_v56  ;;  %v1557_v62 = vadd.f32 %v1556_v60, %v1483_v56  ;;  %v1627_v63 = vpop.f32.mrb[33].mxu1 }
 0x506   : > { %v1628_v1 = vadd.f32 %v1627_v63, %v1483_v56 }
 0x507   : > { %v1634_v2 = vcombine.low %v1555_v58, %v1557_v62 }
 0x508   : > { %v1635_v3 = vcombine.low %v1626_v61, %v1628_v1 }
 0x509   : > { %1638 = vst [vmem:[%s272_s20] sm:$0x77] %v1634_v2 }
 0x50a   : > { %1639 = vst [vmem:[%s272_s20 + $0x8] sm:$0x77] %v1635_v3 }
 0x50b   : > { %2265 = shalt.err (!%p2262_p3)
}
 0x50c   : > { %s2266_s14 = scalar_lea.hbm %s2728_s29, 256  ;;  %s2270_s18 = scalar_lea.hbm %s2777_s7, 512 }
 0x50d   : > { %p2267_p4 = scmp.ne.s32.totalorder %s2728_s29, %s2266_s14  ;;  %p2271_p9 = scmp.lt.u32.totalorder %s2728_s29, %s2777_s7 }
 0x50e   : > { %p2272_p10 = scmp.lt.u32.totalorder %s2270_s18, %s2266_s14  ;;  %p2274_p12 = scmp.lt.u32.totalorder %s2266_s14, %s2728_s29 }
 0x50f   : > { %p2268_p7 = pnand %p2267_p4, %p2397_p5 }
 0x510   : > { %p2273_p11 = por %p2272_p10, %p2271_p9 }
 0x511   : > { %p2269_p8 = pneg %p2268_p7 }
 0x512   : > { %p2275_p13 = por %p2274_p12, %p2273_p11 }
 0x514   : > { %p2276_p0 = pnand %p2275_p13, %p2269_p8 }
 0x516   : > { %2279 = shalt.err (!%p2276_p0)
}
 0x517   : > { %2081 = dma.vmem_to_hbm [thread:$0]  (%p2397_p5), %s2730_s21, 256, %s2728_s29, %s1641_s8  }
 0x518 PF: > { %p2087_p1 = scmp.ge.s32.totalorder %s2314_s27, 2  ;;  %s1667_s22 = sand.u32 1, %s2302_s24  }
 0x519   : > { %s1668_s23 = scalar_lea.sflag [#allocation3], %s1667_s22 }
 0x51a   : > { %p2084_p2 = pnand %p2087_p1, %p2401_p6 }
 0x51c   : > { %2297 = dma.done.wait (!%p2084_p2), %s1668_s23, 256  }
 0x51d   : > { %2299 = vsyncadd (!%p2084_p2), %s1668_s23, 4294967040  ;;  %p17_p3 = scmp.ge.s32.totalorder %s2384_s30, 4   ;;  %s2782_s24 = smov %s2306_s25 }
 0x51e   : > { %s2783_s25 = smov %s2310_s26  ;;  %s2784_s26 = smov %s2395_s10 }
 0x51f   : > { %s2785_s27 = smov %s2384_s30  ;;  %19 = sbr.rel (!%p17_p3) target bundleno = 3 (0x3), region = 87 }
 0x526   :  { %1673 = vsyncpa [#allocation3], 1 }
 0x527   :  { %1675 = vsyncpa [#allocation3 + $0x1], 1 }

</bundles_post_ra>
